<compile_context>
chip_gen: v5e
topology: v5e:2x2
jax: 0.10.0
libtpu: 0.0.40
codegen_flags: <defaults>
</compile_context>

<pallas_src>
import functools

import jax
import jax.numpy as jnp
from jax.experimental import pallas as pl
from jax.experimental.pallas import tpu as pltpu


LANE = 128          # lane-dim padding target (last dim)
ROW_TILE_DEFAULT = 256   # batch rows per grid step (multiple of 16 for bf16)


def _round_up(n, m):
    return ((n + m - 1) // m) * m


def _cdiv(a, b):
    return (a + b - 1) // b


def _pad2(a, rows, cols, dtype):
    r, c = a.shape
    a = jnp.pad(a, ((0, rows - r), (0, cols - c)))
    return a.astype(dtype)


# ----------------------------------------------------------------------------
# Fused BYOL forward kernel: one grid step = one batch row-tile of BOTH views.
#   q = predictor(online(x)),  t = target(x)   (both MLPs: Lin->ReLU->Lin)
# Layer-1 of online & target is a single fused matmul (weights concatenated
# along N), split at lane h_p afterwards.
# ----------------------------------------------------------------------------
def byol_kernel(x1_ref, x2_ref,
                w1c_ref, b1c_ref,                    # [online | target] layer-1
                ow2_ref, ob2_ref,                    # online  layer-2
                tw2_ref, tb2_ref,                    # target  layer-2
                pw1_ref, pb1_ref, pw2_ref, pb2_ref,  # predictor
                q1_ref, q2_ref, t1_ref, t2_ref,
                *, h_p):

    def branch(x):
        # One [T, 2*h_p] matmul: fills the 256-wide MXU N dim on v6e/v7x and
        # reads x once for both the online and target branches.
        h_cat = jnp.dot(x, w1c_ref[...],
                        preferred_element_type=jnp.float32) + b1c_ref[...]
        h_cat = jnp.maximum(h_cat, 0.0).astype(jnp.bfloat16)  # ReLU + bf16 asap
        h_on = h_cat[:, :h_p]
        h_tg = h_cat[:, h_p:]

        z = jnp.dot(h_on, ow2_ref[...],
                    preferred_element_type=jnp.float32) + ob2_ref[...]
        t = jnp.dot(h_tg, tw2_ref[...],
                    preferred_element_type=jnp.float32) + tb2_ref[...]

        # Predictor on the online projection (stays in VMEM, no HBM trip).
        zb = z.astype(jnp.bfloat16)
        hp = jnp.dot(zb, pw1_ref[...],
                     preferred_element_type=jnp.float32) + pb1_ref[...]
        hp = jnp.maximum(hp, 0.0).astype(jnp.bfloat16)
        q = jnp.dot(hp, pw2_ref[...],
                    preferred_element_type=jnp.float32) + pb2_ref[...]
        return q, t

    q1, t2 = branch(x1_ref[...])          # q1 = pred(online(x1)), t2 = target(x1)
    q1_ref[...] = q1.astype(q1_ref.dtype)
    t2_ref[...] = t2.astype(t2_ref.dtype)

    q2, t1 = branch(x2_ref[...])          # q2 = pred(online(x2)), t1 = target(x2)
    q2_ref[...] = q2.astype(q2_ref.dtype)
    t1_ref[...] = t1.astype(t1_ref.dtype)


# ----------------------------------------------------------------------------
# Wrapper: pad to (16,128)-friendly shapes, pick a large batch tile, one call.
# ----------------------------------------------------------------------------
def byol_forward(params, x_view1, x_view2, *,
                 row_tile=ROW_TILE_DEFAULT,
                 single_buffer_weights=False):
    online, target, predictor = params
    B, d_in = x_view1.shape
    h_dim = online[0].shape[1]
    p_dim = online[2].shape[1]

    d_in_p = _round_up(d_in, LANE)
    h_p = _round_up(h_dim, LANE)
    p_p = _round_up(p_dim, LANE)

    # --- batch tiling: big tiles (MXU fill + amortized step overhead), kept a
    # multiple of 16 for bf16 sublane packing, balanced to minimize padding.
    rows16 = _round_up(B, 16)
    row_tile = max(16, min(_round_up(row_tile, 16), rows16))
    n_tiles = _cdiv(rows16, row_tile)
    row_tile = _round_up(_cdiv(rows16, n_tiles), 16)
    # v7x megacore: prefer >= 2 grid steps so the "parallel" axis splits
    # across both TensorCores (only when it costs no extra padding).
    if n_tiles == 1 and row_tile >= 32 and row_tile % 32 == 0:
        row_tile //= 2
        n_tiles = 2
    B_p = n_tiles * row_tile

    # --- inputs: pad + cast each view (XLA fuses this; no [2B, D] concat copy)
    x1p = _pad2(x_view1, B_p, d_in_p, jnp.bfloat16)
    x2p = _pad2(x_view2, B_p, d_in_p, jnp.bfloat16)

    ow1, ob1, ow2, ob2 = online
    tw1, tb1, tw2, tb2 = target
    pw1, pb1, pw2, pb2 = predictor

    # --- fuse online/target layer-1 along N: [d_in_p, 2*h_p]
    w1c = jnp.concatenate([_pad2(ow1, d_in_p, h_p, jnp.bfloat16),
                           _pad2(tw1, d_in_p, h_p, jnp.bfloat16)], axis=1)
    b1c = jnp.concatenate([_pad2(ob1, 1, h_p, jnp.float32),
                           _pad2(tb1, 1, h_p, jnp.float32)], axis=1)
    ow2p = _pad2(ow2, h_p, p_p, jnp.bfloat16)
    ob2p = _pad2(ob2, 1, p_p, jnp.float32)
    tw2p = _pad2(tw2, h_p, p_p, jnp.bfloat16)
    tb2p = _pad2(tb2, 1, p_p, jnp.float32)
    pw1p = _pad2(pw1, p_p, h_p, jnp.bfloat16)
    pb1p = _pad2(pb1, 1, h_p, jnp.float32)
    pw2p = _pad2(pw2, h_p, p_p, jnp.bfloat16)
    pb2p = _pad2(pb2, 1, p_p, jnp.float32)

    weights = (w1c, b1c, ow2p, ob2p, tw2p, tb2p, pw1p, pb1p, pw2p, pb2p)

    # --- VMEM budget: weights (pipelined buffers) + double-buffered x/q/t
    # tiles + f32/bf16 intermediates + headroom.
    weight_bytes = sum(int(a.size) * a.dtype.itemsize for a in weights)
    io_tile_bytes = 2 * row_tile * d_in_p * 2 + 4 * row_tile * p_p * 4
    interm_bytes = row_tile * (2 * h_p * 6 + h_p * 6 + 3 * p_p * 6)
    wbuf = 1 if single_buffer_weights else 2
    vmem_limit = (wbuf * weight_bytes + 2 * io_tile_bytes
                  + interm_bytes + (8 << 20))
    vmem_limit = int(min(vmem_limit, 96 * 1024 * 1024))

    # Weights/biases: full-extent blocks, constant index_map (VMEM resident).
    def full(shape):
        idx = lambda i: (0,) * len(shape)
        if single_buffer_weights:
            # v7x (64 MiB VMEM): avoid double-buffering grid-invariant weights.
            return pl.BlockSpec(shape, idx, pipeline_mode=pl.Buffered(1))
        return pl.BlockSpec(shape, idx)

    # Activations/outputs: tiled along the batch axis (lane-dense stores).
    row_blk = lambda cols: pl.BlockSpec((row_tile, cols), lambda i: (i, 0))

    kernel = functools.partial(byol_kernel, h_p=h_p)

    q1f, q2f, t1f, t2f = pl.pallas_call(
        kernel,
        out_shape=(jax.ShapeDtypeStruct((B_p, p_p), jnp.float32),
                   jax.ShapeDtypeStruct((B_p, p_p), jnp.float32),
                   jax.ShapeDtypeStruct((B_p, p_p), jnp.float32),
                   jax.ShapeDtypeStruct((B_p, p_p), jnp.float32)),
        grid=(n_tiles,),
        in_specs=[
            row_blk(d_in_p), row_blk(d_in_p),                    # x1, x2
            full((d_in_p, 2 * h_p)), full((1, 2 * h_p)),         # [on|tg] W1,b1
            full((h_p, p_p)), full((1, p_p)),                    # online W2,b2
            full((h_p, p_p)), full((1, p_p)),                    # target W2,b2
            full((p_p, h_p)), full((1, h_p)),                    # pred   W1,b1
            full((h_p, p_p)), full((1, p_p)),                    # pred   W2,b2
        ],
        out_specs=(row_blk(p_p), row_blk(p_p), row_blk(p_p), row_blk(p_p)),
        compiler_params=pltpu.CompilerParams(
            dimension_semantics=("parallel",),
            vmem_limit_bytes=vmem_limit),
    )(x1p, x2p, *weights)

    q1 = q1f[:B, :p_dim]
    q2 = q2f[:B, :p_dim]
    # torch.no_grad() / requires_grad=False -> stop_gradient on target branch.
    t1 = jax.lax.stop_gradient(t1f[:B, :p_dim])   # target(x_view2)
    t2 = jax.lax.stop_gradient(t2f[:B, :p_dim])   # target(x_view1)
    return q1, q2, t1, t2


def momentum_update(online, target, tau):
    # param_k = tau * param_k + (1 - tau) * param_q   (plain JAX glue)
    return jax.tree_util.tree_map(lambda k, q: tau * k + (1.0 - tau) * q,
                                  target, online)


# ----------------------------------------------------------------------------
# Parameter construction (deterministic, PyTorch-Linear-style uniform init)
# ----------------------------------------------------------------------------
def init_linear(key, fan_in, fan_out):
    k_w, k_b = jax.random.split(key)
    bound = 1.0 / jnp.sqrt(jnp.float32(fan_in))
    w = jax.random.uniform(k_w, (fan_in, fan_out), jnp.float32, -bound, bound)
    b = jax.random.uniform(k_b, (1, fan_out), jnp.float32, -bound, bound)
    return w, b


def init_mlp2(key, d_in, d_hidden, d_out):
    k1, k2 = jax.random.split(key)
    w1, b1 = init_linear(k1, d_in, d_hidden)
    w2, b2 = init_linear(k2, d_hidden, d_out)
    return (w1, b1, w2, b2)


def init_byol_params(key, d_in, d_hidden, d_proj):
    k_online, k_pred = jax.random.split(key)
    online = init_mlp2(k_online, d_in, d_hidden, d_proj)
    # __init__: param_k.data.copy_(param_q.data) -> target is an exact copy.
    target = jax.tree_util.tree_map(lambda p: p.copy(), online)
    predictor = init_mlp2(k_pred, d_proj, d_hidden, d_proj)
    return online, target, predictor


# ----------------------------------------------------------------------------
# Pure-JAX reference (mirrors the kernel's bf16-input / f32-accum matmuls)
# ----------------------------------------------------------------------------
def mlp2_ref(x, w1, b1, w2, b2):
    h = jnp.dot(x.astype(jnp.bfloat16), w1.astype(jnp.bfloat16),
                preferred_element_type=jnp.float32) + b1
    h = jnp.maximum(h, 0.0)
    return jnp.dot(h.astype(jnp.bfloat16), w2.astype(jnp.bfloat16),
                   preferred_element_type=jnp.float32) + b2


def byol_forward_ref(params, x1, x2):
    online, target, predictor = params
    q1 = mlp2_ref(mlp2_ref(x1, *online), *predictor)
    q2 = mlp2_ref(mlp2_ref(x2, *online), *predictor)
    t1 = mlp2_ref(x2, *target)
    t2 = mlp2_ref(x1, *target)
    return q1, q2, t1, t2


if __name__ == "__main__":
    B, D_IN, D_HIDDEN, D_PROJ = 8, 32, 64, 32

    key = jax.random.PRNGKey(0)
    k_params, k_x1, k_x2 = jax.random.split(key, 3)

    params = init_byol_params(k_params, D_IN, D_HIDDEN, D_PROJ)
    x_view1 = jax.random.normal(k_x1, (B, D_IN), jnp.float32)
    x_view2 = jax.random.normal(k_x2, (B, D_IN), jnp.float32)

    q1, q2, t1, t2 = jax.block_until_ready(
        jax.jit(byol_forward)(params, x_view1, x_view2))

    # sanity-check against the pure-JAX reference
    rq1, rq2, rt1, rt2 = byol_forward_ref(params, x_view1, x_view2)
    for got, want in ((q1, rq1), (q2, rq2), (t1, rt1), (t2, rt2)):
        assert got.shape == want.shape and got.dtype == want.dtype
        assert jnp.allclose(got, want, atol=1e-3, rtol=1e-3)

    # target was initialized as an exact copy of online, so
    # target(x_view1) == online(x_view1)  (pre-predictor)
    z1_ref = mlp2_ref(x_view1, *params[0])
    assert jnp.allclose(t2, z1_ref, atol=1e-3, rtol=1e-3)

    print("KERNEL_OK")
</pallas_src>

<mosaic_0001>
module attributes {stable_mosaic.version = 11 : i64} {
  func.func @byol_kernel(%arg0: i32, %arg1: memref<16x128xbf16, #tpu.memory_space<vmem>>, %arg2: memref<16x128xbf16, #tpu.memory_space<vmem>>, %arg3: memref<128x256xbf16, #tpu.memory_space<vmem>>, %arg4: memref<1x256xf32, #tpu.memory_space<vmem>>, %arg5: memref<128x128xbf16, #tpu.memory_space<vmem>>, %arg6: memref<1x128xf32, #tpu.memory_space<vmem>>, %arg7: memref<128x128xbf16, #tpu.memory_space<vmem>>, %arg8: memref<1x128xf32, #tpu.memory_space<vmem>>, %arg9: memref<128x128xbf16, #tpu.memory_space<vmem>>, %arg10: memref<1x128xf32, #tpu.memory_space<vmem>>, %arg11: memref<128x128xbf16, #tpu.memory_space<vmem>>, %arg12: memref<1x128xf32, #tpu.memory_space<vmem>>, %arg13: memref<16x128xf32, #tpu.memory_space<vmem>>, %arg14: memref<16x128xf32, #tpu.memory_space<vmem>>, %arg15: memref<16x128xf32, #tpu.memory_space<vmem>>, %arg16: memref<16x128xf32, #tpu.memory_space<vmem>>) attributes {dimension_semantics = [#tpu.dimension_semantics<parallel>], iteration_bounds = array<i64: 1>, scalar_prefetch = 0 : i64, scratch_operands = 0 : i64, tpu.core_type = #tpu.core_type<tc>, window_params = [{transform_indices = @transform_0, window_bounds = array<i64: 16, 128>}, {transform_indices = @transform_1, window_bounds = array<i64: 16, 128>}, {pipeline_mode = #tpu.pipeline_mode<synchronous>, transform_indices = @transform_2, window_bounds = array<i64: 128, 256>}, {pipeline_mode = #tpu.pipeline_mode<synchronous>, transform_indices = @transform_3, window_bounds = array<i64: 1, 256>}, {pipeline_mode = #tpu.pipeline_mode<synchronous>, transform_indices = @transform_4, window_bounds = array<i64: 128, 128>}, {pipeline_mode = #tpu.pipeline_mode<synchronous>, transform_indices = @transform_5, window_bounds = array<i64: 1, 128>}, {pipeline_mode = #tpu.pipeline_mode<synchronous>, transform_indices = @transform_6, window_bounds = array<i64: 128, 128>}, {pipeline_mode = #tpu.pipeline_mode<synchronous>, transform_indices = @transform_7, window_bounds = array<i64: 1, 128>}, {pipeline_mode = #tpu.pipeline_mode<synchronous>, transform_indices = @transform_8, window_bounds = array<i64: 128, 128>}, {pipeline_mode = #tpu.pipeline_mode<synchronous>, transform_indices = @transform_9, window_bounds = array<i64: 1, 128>}, {pipeline_mode = #tpu.pipeline_mode<synchronous>, transform_indices = @transform_10, window_bounds = array<i64: 128, 128>}, {pipeline_mode = #tpu.pipeline_mode<synchronous>, transform_indices = @transform_11, window_bounds = array<i64: 1, 128>}, {transform_indices = @transform_12, window_bounds = array<i64: 16, 128>}, {transform_indices = @transform_13, window_bounds = array<i64: 16, 128>}, {transform_indices = @transform_14, window_bounds = array<i64: 16, 128>}, {transform_indices = @transform_15, window_bounds = array<i64: 16, 128>}]} {
    %c0 = arith.constant 0 : index
    %c0_0 = arith.constant 0 : index
    %0 = vector.load %arg1[%c0, %c0_0] : memref<16x128xbf16, #tpu.memory_space<vmem>>, vector<16x128xbf16>
    %c0_1 = arith.constant 0 : index
    %c0_2 = arith.constant 0 : index
    %1 = vector.load %arg3[%c0_1, %c0_2] : memref<128x256xbf16, #tpu.memory_space<vmem>>, vector<128x256xbf16>
    %cst = arith.constant dense<0.000000e+00> : vector<16x256xf32>
    %2 = tpu.matmul %0, %1, %cst {dimension_numbers = #tpu.dot_dimension_numbers<[1], [0], [0], [1], [0, 0, 1, 1], [], []>} : vector<16x128xbf16>, vector<128x256xbf16>, vector<16x256xf32> -> vector<16x256xf32>
    %c0_3 = arith.constant 0 : index
    %c0_4 = arith.constant 0 : index
    %3 = vector.load %arg4[%c0_3, %c0_4] : memref<1x256xf32, #tpu.memory_space<vmem>>, vector<1x256xf32>
    %4 = vector.broadcast %3 : vector<1x256xf32> to vector<16x256xf32>
    %5 = arith.addf %2, %4 : vector<16x256xf32>
    %cst_5 = arith.constant 0.000000e+00 : f32
    %6 = vector.broadcast %cst_5 : f32 to vector<16x256xf32>
    %7 = arith.maximumf %5, %6 : vector<16x256xf32>
    %8 = arith.truncf %7 : vector<16x256xf32> to vector<16x256xbf16>
    %9 = vector.extract_strided_slice %8 {offsets = [0, 0], sizes = [16, 128], strides = [1, 1]} : vector<16x256xbf16> to vector<16x128xbf16>
    %10 = vector.extract_strided_slice %8 {offsets = [0, 128], sizes = [16, 128], strides = [1, 1]} : vector<16x256xbf16> to vector<16x128xbf16>
    %c0_6 = arith.constant 0 : index
    %c0_7 = arith.constant 0 : index
    %11 = vector.load %arg5[%c0_6, %c0_7] : memref<128x128xbf16, #tpu.memory_space<vmem>>, vector<128x128xbf16>
    %cst_8 = arith.constant dense<0.000000e+00> : vector<16x128xf32>
    %12 = tpu.matmul %9, %11, %cst_8 {dimension_numbers = #tpu.dot_dimension_numbers<[1], [0], [0], [1], [0, 0, 1, 1], [], []>} : vector<16x128xbf16>, vector<128x128xbf16>, vector<16x128xf32> -> vector<16x128xf32>
    %c0_9 = arith.constant 0 : index
    %c0_10 = arith.constant 0 : index
    %13 = vector.load %arg6[%c0_9, %c0_10] : memref<1x128xf32, #tpu.memory_space<vmem>>, vector<1x128xf32>
    %14 = vector.broadcast %13 : vector<1x128xf32> to vector<16x128xf32>
    %15 = arith.addf %12, %14 : vector<16x128xf32>
    %c0_11 = arith.constant 0 : index
    %c0_12 = arith.constant 0 : index
    %16 = vector.load %arg7[%c0_11, %c0_12] : memref<128x128xbf16, #tpu.memory_space<vmem>>, vector<128x128xbf16>
    %cst_13 = arith.constant dense<0.000000e+00> : vector<16x128xf32>
    %17 = tpu.matmul %10, %16, %cst_13 {dimension_numbers = #tpu.dot_dimension_numbers<[1], [0], [0], [1], [0, 0, 1, 1], [], []>} : vector<16x128xbf16>, vector<128x128xbf16>, vector<16x128xf32> -> vector<16x128xf32>
    %c0_14 = arith.constant 0 : index
    %c0_15 = arith.constant 0 : index
    %18 = vector.load %arg8[%c0_14, %c0_15] : memref<1x128xf32, #tpu.memory_space<vmem>>, vector<1x128xf32>
    %19 = vector.broadcast %18 : vector<1x128xf32> to vector<16x128xf32>
    %20 = arith.addf %17, %19 : vector<16x128xf32>
    %21 = arith.truncf %15 : vector<16x128xf32> to vector<16x128xbf16>
    %c0_16 = arith.constant 0 : index
    %c0_17 = arith.constant 0 : index
    %22 = vector.load %arg9[%c0_16, %c0_17] : memref<128x128xbf16, #tpu.memory_space<vmem>>, vector<128x128xbf16>
    %cst_18 = arith.constant dense<0.000000e+00> : vector<16x128xf32>
    %23 = tpu.matmul %21, %22, %cst_18 {dimension_numbers = #tpu.dot_dimension_numbers<[1], [0], [0], [1], [0, 0, 1, 1], [], []>} : vector<16x128xbf16>, vector<128x128xbf16>, vector<16x128xf32> -> vector<16x128xf32>
    %c0_19 = arith.constant 0 : index
    %c0_20 = arith.constant 0 : index
    %24 = vector.load %arg10[%c0_19, %c0_20] : memref<1x128xf32, #tpu.memory_space<vmem>>, vector<1x128xf32>
    %25 = vector.broadcast %24 : vector<1x128xf32> to vector<16x128xf32>
    %26 = arith.addf %23, %25 : vector<16x128xf32>
    %cst_21 = arith.constant 0.000000e+00 : f32
    %27 = vector.broadcast %cst_21 : f32 to vector<16x128xf32>
    %28 = arith.maximumf %26, %27 : vector<16x128xf32>
    %29 = arith.truncf %28 : vector<16x128xf32> to vector<16x128xbf16>
    %c0_22 = arith.constant 0 : index
    %c0_23 = arith.constant 0 : index
    %30 = vector.load %arg11[%c0_22, %c0_23] : memref<128x128xbf16, #tpu.memory_space<vmem>>, vector<128x128xbf16>
    %cst_24 = arith.constant dense<0.000000e+00> : vector<16x128xf32>
    %31 = tpu.matmul %29, %30, %cst_24 {dimension_numbers = #tpu.dot_dimension_numbers<[1], [0], [0], [1], [0, 0, 1, 1], [], []>} : vector<16x128xbf16>, vector<128x128xbf16>, vector<16x128xf32> -> vector<16x128xf32>
    %c0_25 = arith.constant 0 : index
    %c0_26 = arith.constant 0 : index
    %32 = vector.load %arg12[%c0_25, %c0_26] : memref<1x128xf32, #tpu.memory_space<vmem>>, vector<1x128xf32>
    %33 = vector.broadcast %32 : vector<1x128xf32> to vector<16x128xf32>
    %34 = arith.addf %31, %33 : vector<16x128xf32>
    %c0_27 = arith.constant 0 : index
    %c0_28 = arith.constant 0 : index
    %35 = vector.load %arg13[%c0_27, %c0_28] : memref<16x128xf32, #tpu.memory_space<vmem>>, vector<16x128xf32>
    tpu.vector_store %arg13[%c0_27, %c0_28], %34 {strides = array<i32>} : memref<16x128xf32, #tpu.memory_space<vmem>>, vector<16x128xf32>,
    %c0_29 = arith.constant 0 : index
    %c0_30 = arith.constant 0 : index
    %36 = vector.load %arg16[%c0_29, %c0_30] : memref<16x128xf32, #tpu.memory_space<vmem>>, vector<16x128xf32>
    tpu.vector_store %arg16[%c0_29, %c0_30], %20 {strides = array<i32>} : memref<16x128xf32, #tpu.memory_space<vmem>>, vector<16x128xf32>,
    %c0_31 = arith.constant 0 : index
    %c0_32 = arith.constant 0 : index
    %37 = vector.load %arg2[%c0_31, %c0_32] : memref<16x128xbf16, #tpu.memory_space<vmem>>, vector<16x128xbf16>
    %c0_33 = arith.constant 0 : index
    %c0_34 = arith.constant 0 : index
    %38 = vector.load %arg3[%c0_33, %c0_34] : memref<128x256xbf16, #tpu.memory_space<vmem>>, vector<128x256xbf16>
    %cst_35 = arith.constant dense<0.000000e+00> : vector<16x256xf32>
    %39 = tpu.matmul %37, %38, %cst_35 {dimension_numbers = #tpu.dot_dimension_numbers<[1], [0], [0], [1], [0, 0, 1, 1], [], []>} : vector<16x128xbf16>, vector<128x256xbf16>, vector<16x256xf32> -> vector<16x256xf32>
    %c0_36 = arith.constant 0 : index
    %c0_37 = arith.constant 0 : index
    %40 = vector.load %arg4[%c0_36, %c0_37] : memref<1x256xf32, #tpu.memory_space<vmem>>, vector<1x256xf32>
    %41 = vector.broadcast %40 : vector<1x256xf32> to vector<16x256xf32>
    %42 = arith.addf %39, %41 : vector<16x256xf32>
    %cst_38 = arith.constant 0.000000e+00 : f32
    %43 = vector.broadcast %cst_38 : f32 to vector<16x256xf32>
    %44 = arith.maximumf %42, %43 : vector<16x256xf32>
    %45 = arith.truncf %44 : vector<16x256xf32> to vector<16x256xbf16>
    %46 = vector.extract_strided_slice %45 {offsets = [0, 0], sizes = [16, 128], strides = [1, 1]} : vector<16x256xbf16> to vector<16x128xbf16>
    %47 = vector.extract_strided_slice %45 {offsets = [0, 128], sizes = [16, 128], strides = [1, 1]} : vector<16x256xbf16> to vector<16x128xbf16>
    %c0_39 = arith.constant 0 : index
    %c0_40 = arith.constant 0 : index
    %48 = vector.load %arg5[%c0_39, %c0_40] : memref<128x128xbf16, #tpu.memory_space<vmem>>, vector<128x128xbf16>
    %cst_41 = arith.constant dense<0.000000e+00> : vector<16x128xf32>
    %49 = tpu.matmul %46, %48, %cst_41 {dimension_numbers = #tpu.dot_dimension_numbers<[1], [0], [0], [1], [0, 0, 1, 1], [], []>} : vector<16x128xbf16>, vector<128x128xbf16>, vector<16x128xf32> -> vector<16x128xf32>
    %c0_42 = arith.constant 0 : index
    %c0_43 = arith.constant 0 : index
    %50 = vector.load %arg6[%c0_42, %c0_43] : memref<1x128xf32, #tpu.memory_space<vmem>>, vector<1x128xf32>
    %51 = vector.broadcast %50 : vector<1x128xf32> to vector<16x128xf32>
    %52 = arith.addf %49, %51 : vector<16x128xf32>
    %c0_44 = arith.constant 0 : index
    %c0_45 = arith.constant 0 : index
    %53 = vector.load %arg7[%c0_44, %c0_45] : memref<128x128xbf16, #tpu.memory_space<vmem>>, vector<128x128xbf16>
    %cst_46 = arith.constant dense<0.000000e+00> : vector<16x128xf32>
    %54 = tpu.matmul %47, %53, %cst_46 {dimension_numbers = #tpu.dot_dimension_numbers<[1], [0], [0], [1], [0, 0, 1, 1], [], []>} : vector<16x128xbf16>, vector<128x128xbf16>, vector<16x128xf32> -> vector<16x128xf32>
    %c0_47 = arith.constant 0 : index
    %c0_48 = arith.constant 0 : index
    %55 = vector.load %arg8[%c0_47, %c0_48] : memref<1x128xf32, #tpu.memory_space<vmem>>, vector<1x128xf32>
    %56 = vector.broadcast %55 : vector<1x128xf32> to vector<16x128xf32>
    %57 = arith.addf %54, %56 : vector<16x128xf32>
    %58 = arith.truncf %52 : vector<16x128xf32> to vector<16x128xbf16>
    %c0_49 = arith.constant 0 : index
    %c0_50 = arith.constant 0 : index
    %59 = vector.load %arg9[%c0_49, %c0_50] : memref<128x128xbf16, #tpu.memory_space<vmem>>, vector<128x128xbf16>
    %cst_51 = arith.constant dense<0.000000e+00> : vector<16x128xf32>
    %60 = tpu.matmul %58, %59, %cst_51 {dimension_numbers = #tpu.dot_dimension_numbers<[1], [0], [0], [1], [0, 0, 1, 1], [], []>} : vector<16x128xbf16>, vector<128x128xbf16>, vector<16x128xf32> -> vector<16x128xf32>
    %c0_52 = arith.constant 0 : index
    %c0_53 = arith.constant 0 : index
    %61 = vector.load %arg10[%c0_52, %c0_53] : memref<1x128xf32, #tpu.memory_space<vmem>>, vector<1x128xf32>
    %62 = vector.broadcast %61 : vector<1x128xf32> to vector<16x128xf32>
    %63 = arith.addf %60, %62 : vector<16x128xf32>
    %cst_54 = arith.constant 0.000000e+00 : f32
    %64 = vector.broadcast %cst_54 : f32 to vector<16x128xf32>
    %65 = arith.maximumf %63, %64 : vector<16x128xf32>
    %66 = arith.truncf %65 : vector<16x128xf32> to vector<16x128xbf16>
    %c0_55 = arith.constant 0 : index
    %c0_56 = arith.constant 0 : index
    %67 = vector.load %arg11[%c0_55, %c0_56] : memref<128x128xbf16, #tpu.memory_space<vmem>>, vector<128x128xbf16>
    %cst_57 = arith.constant dense<0.000000e+00> : vector<16x128xf32>
    %68 = tpu.matmul %66, %67, %cst_57 {dimension_numbers = #tpu.dot_dimension_numbers<[1], [0], [0], [1], [0, 0, 1, 1], [], []>} : vector<16x128xbf16>, vector<128x128xbf16>, vector<16x128xf32> -> vector<16x128xf32>
    %c0_58 = arith.constant 0 : index
    %c0_59 = arith.constant 0 : index
    %69 = vector.load %arg12[%c0_58, %c0_59] : memref<1x128xf32, #tpu.memory_space<vmem>>, vector<1x128xf32>
    %70 = vector.broadcast %69 : vector<1x128xf32> to vector<16x128xf32>
    %71 = arith.addf %68, %70 : vector<16x128xf32>
    %c0_60 = arith.constant 0 : index
    %c0_61 = arith.constant 0 : index
    %72 = vector.load %arg14[%c0_60, %c0_61] : memref<16x128xf32, #tpu.memory_space<vmem>>, vector<16x128xf32>
    tpu.vector_store %arg14[%c0_60, %c0_61], %71 {strides = array<i32>} : memref<16x128xf32, #tpu.memory_space<vmem>>, vector<16x128xf32>,
    %c0_62 = arith.constant 0 : index
    %c0_63 = arith.constant 0 : index
    %73 = vector.load %arg15[%c0_62, %c0_63] : memref<16x128xf32, #tpu.memory_space<vmem>>, vector<16x128xf32>
    tpu.vector_store %arg15[%c0_62, %c0_63], %57 {strides = array<i32>} : memref<16x128xf32, #tpu.memory_space<vmem>>, vector<16x128xf32>,
    return
  }
  func.func @transform_0(%arg0: i32) -> (i32, i32) {
    %c0_i32 = arith.constant 0 : i32
    %c0_i32_0 = arith.constant 0 : i32
    return %arg0, %c0_i32 : i32, i32
  }
  func.func @transform_1(%arg0: i32) -> (i32, i32) {
    %c0_i32 = arith.constant 0 : i32
    %c0_i32_0 = arith.constant 0 : i32
    return %arg0, %c0_i32 : i32, i32
  }
  func.func @transform_2(%arg0: i32) -> (i32, i32) {
    %c0_i32 = arith.constant 0 : i32
    %c0_i32_0 = arith.constant 0 : i32
    %c0_i32_1 = arith.constant 0 : i32
    return %c0_i32, %c0_i32_0 : i32, i32
  }
  func.func @transform_3(%arg0: i32) -> (i32, i32) {
    %c0_i32 = arith.constant 0 : i32
    %c0_i32_0 = arith.constant 0 : i32
    %c0_i32_1 = arith.constant 0 : i32
    return %c0_i32, %c0_i32_0 : i32, i32
  }
  func.func @transform_4(%arg0: i32) -> (i32, i32) {
    %c0_i32 = arith.constant 0 : i32
    %c0_i32_0 = arith.constant 0 : i32
    %c0_i32_1 = arith.constant 0 : i32
    return %c0_i32, %c0_i32_0 : i32, i32
  }
  func.func @transform_5(%arg0: i32) -> (i32, i32) {
    %c0_i32 = arith.constant 0 : i32
    %c0_i32_0 = arith.constant 0 : i32
    %c0_i32_1 = arith.constant 0 : i32
    return %c0_i32, %c0_i32_0 : i32, i32
  }
  func.func @transform_6(%arg0: i32) -> (i32, i32) {
    %c0_i32 = arith.constant 0 : i32
    %c0_i32_0 = arith.constant 0 : i32
    %c0_i32_1 = arith.constant 0 : i32
    return %c0_i32, %c0_i32_0 : i32, i32
  }
  func.func @transform_7(%arg0: i32) -> (i32, i32) {
    %c0_i32 = arith.constant 0 : i32
    %c0_i32_0 = arith.constant 0 : i32
    %c0_i32_1 = arith.constant 0 : i32
    return %c0_i32, %c0_i32_0 : i32, i32
  }
  func.func @transform_8(%arg0: i32) -> (i32, i32) {
    %c0_i32 = arith.constant 0 : i32
    %c0_i32_0 = arith.constant 0 : i32
    %c0_i32_1 = arith.constant 0 : i32
    return %c0_i32, %c0_i32_0 : i32, i32
  }
  func.func @transform_9(%arg0: i32) -> (i32, i32) {
    %c0_i32 = arith.constant 0 : i32
    %c0_i32_0 = arith.constant 0 : i32
    %c0_i32_1 = arith.constant 0 : i32
    return %c0_i32, %c0_i32_0 : i32, i32
  }
  func.func @transform_10(%arg0: i32) -> (i32, i32) {
    %c0_i32 = arith.constant 0 : i32
    %c0_i32_0 = arith.constant 0 : i32
    %c0_i32_1 = arith.constant 0 : i32
    return %c0_i32, %c0_i32_0 : i32, i32
  }
  func.func @transform_11(%arg0: i32) -> (i32, i32) {
    %c0_i32 = arith.constant 0 : i32
    %c0_i32_0 = arith.constant 0 : i32
    %c0_i32_1 = arith.constant 0 : i32
    return %c0_i32, %c0_i32_0 : i32, i32
  }
  func.func @transform_12(%arg0: i32) -> (i32, i32) {
    %c0_i32 = arith.constant 0 : i32
    %c0_i32_0 = arith.constant 0 : i32
    return %arg0, %c0_i32 : i32, i32
  }
  func.func @transform_13(%arg0: i32) -> (i32, i32) {
    %c0_i32 = arith.constant 0 : i32
    %c0_i32_0 = arith.constant 0 : i32
    return %arg0, %c0_i32 : i32, i32
  }
  func.func @transform_14(%arg0: i32) -> (i32, i32) {
    %c0_i32 = arith.constant 0 : i32
    %c0_i32_0 = arith.constant 0 : i32
    return %arg0, %c0_i32 : i32, i32
  }
  func.func @transform_15(%arg0: i32) -> (i32, i32) {
    %c0_i32 = arith.constant 0 : i32
    %c0_i32_0 = arith.constant 0 : i32
    return %arg0, %c0_i32 : i32, i32
  }
}

</mosaic_0001>

<bundles_post_ra>
// kernel: byol_forward.1
= control target key start
LH: loop header
LB: loop body
LE: loop exit
PB: predicated region body
PF: predicated region fallthrough
CT: control target
= control target key end

     0   :  { %s2063_s2 = inlined_call_operand.vmem [shape: bf16[128,256], index: 2, kind: input, shape index: {}]   ;;  %s2064_s4 = inlined_call_operand.vmem [shape: bf16[128,128], index: 4, kind: input, shape index: {}]   ;;  %s2065_s6 = inlined_call_operand.vmem [shape: bf16[128,128], index: 6, kind: input, shape index: {}]   ;;  %s2066_s0 = inlined_call_operand.vmem [shape: bf16[16,128], index: 0, kind: input, shape index: {}]   ;;  %s2067_s5 = inlined_call_operand.vmem [shape: f32[1,128], index: 5, kind: input, shape index: {}]   ;;  %s2068_s3 = inlined_call_operand.vmem [shape: f32[1,256], index: 3, kind: input, shape index: {}]   ;;  %s2069_s8 = inlined_call_operand.vmem [shape: bf16[128,128], index: 8, kind: input, shape index: {}]   ;;  %s2070_s7 = inlined_call_operand.vmem [shape: f32[1,128], index: 7, kind: input, shape index: {}]   ;;  %s2071_s1 = inlined_call_operand.vmem [shape: bf16[16,128], index: 1, kind: input, shape index: {}]   ;;  %s2072_s9 = inlined_call_operand.vmem [shape: f32[1,128], index: 9, kind: input, shape index: {}]   ;;  %s2073_s15 = inlined_call_operand.vmem [shape: f32[16,128], index: 15, kind: output, shape index: {3}]   ;;  %s2074_s10 = inlined_call_operand.vmem [shape: bf16[128,128], index: 10, kind: input, shape index: {}]   ;;  %s2075_s11 = inlined_call_operand.vmem [shape: f32[1,128], index: 11, kind: input, shape index: {}]   ;;  %s2076_s12 = inlined_call_operand.vmem [shape: f32[16,128], index: 12, kind: output, shape index: {0}]   ;;  %s2077_s14 = inlined_call_operand.vmem [shape: f32[16,128], index: 14, kind: output, shape index: {2}]   ;;  %s2078_s13 = inlined_call_operand.vmem [shape: f32[16,128], index: 13, kind: output, shape index: {1}]  }
   0x1   :  { %v1103_v0 = vld [vmem:[%s2063_s2 + $0x70] sm:$0xf]  ;;  %v1449_v1 = vld [vmem:[%s2063_s2 + $0x74] sm:$0xf0]  ;;  %v1448_v2 = vld [vmem:[%s2063_s2 + $0x74] sm:$0xf] }
   0x2   :  { %v1104_v3 = vor.u32 %v1449_v1, %v1103_v0  ;;  %v1105_v4 = vld [vmem:[%s2063_s2 + $0x78] sm:$0xf0]  ;;  %v1095_v5 = vld [vmem:[%s2063_s2 + $0x60] sm:$0xf]  ;;  %v1447_v6 = vld [vmem:[%s2063_s2 + $0x64] sm:$0xf0] }
   0x3   :  { %v1108_v7 = vor.u32 %v1448_v2, %v1105_v4  ;;  %v1446_v8 = vld [vmem:[%s2063_s2 + $0x64] sm:$0xf]  ;;  %v1097_v9 = vld [vmem:[%s2063_s2 + $0x68] sm:$0xf0]  ;;  %v1096_v10 = vor.u32 %v1447_v6, %v1095_v5  ;;  %v1087_v12 = vld [vmem:[%s2063_s2 + $0x50] sm:$0xf] }
   0x4   :  { %155 = vmatpush.bf16.msra.mxu0 %v1104_v3  ;;  %v1100_v11 = vor.u32 %v1446_v8, %v1097_v9  ;;  %v1445_v13 = vld [vmem:[%s2063_s2 + $0x54] sm:$0xf0]  ;;  %v1444_v14 = vld [vmem:[%s2063_s2 + $0x54] sm:$0xf]  ;;  %v1089_v15 = vld [vmem:[%s2063_s2 + $0x58] sm:$0xf0] }
   0x5   :  { %169 = vmatpush.bf16.msra.mxu1 %v1108_v7  ;;  %v1088_v16 = vor.u32 %v1445_v13, %v1087_v12  ;;  %v1092_v17 = vor.u32 %v1444_v14, %v1089_v15  ;;  %v1079_v18 = vld [vmem:[%s2063_s2 + $0x40] sm:$0xf]  ;;  %v1443_v19 = vld [vmem:[%s2063_s2 + $0x44] sm:$0xf0]  ;;  %v1442_v20 = vld [vmem:[%s2063_s2 + $0x44] sm:$0xf] }
   0x6   :  { %v1081_v21 = vld [vmem:[%s2063_s2 + $0x48] sm:$0xf0]  ;;  %v1080_v22 = vor.u32 %v1443_v19, %v1079_v18  ;;  %v1457_v23 = vld [vmem:[%s2064_s4 + $0x38] sm:$0xff]  ;;  %v1071_v26 = vld [vmem:[%s2063_s2 + $0x30] sm:$0xf] }
   0x7   :  { %v1465_v24 = vld [vmem:[%s2065_s6 + $0x38] sm:$0xff]  ;;  %v1084_v25 = vor.u32 %v1442_v20, %v1081_v21  ;;  %v1440_v28 = vld [vmem:[%s2063_s2 + $0x34] sm:$0xf]  ;;  %263 = vmatpush.bf16.msra.mxu2 %v1457_v23  ;;  %v1063_v34 = vld [vmem:[%s2063_s2 + $0x20] sm:$0xf] }
   0x8   :  { %156 = vmatpush.bf16.msra.mxu0 %v1096_v10  ;;  %v1441_v27 = vld [vmem:[%s2063_s2 + $0x34] sm:$0xf0]  ;;  %v1073_v29 = vld [vmem:[%s2063_s2 + $0x38] sm:$0xf0]  ;;  %349 = vmatpush.bf16.msra.mxu3 %v1465_v24  ;;  %v1456_v30 = vld [vmem:[%s2064_s4 + $0x30] sm:$0xff] }
   0x9   :  { %170 = vmatpush.bf16.msra.mxu1 %v1100_v11  ;;  %v1464_v31 = vld [vmem:[%s2065_s6 + $0x30] sm:$0xff]  ;;  %v1072_v32 = vor.u32 %v1441_v27, %v1071_v26  ;;  %v1076_v33 = vor.u32 %v1440_v28, %v1073_v29  ;;  %v1439_v35 = vld [vmem:[%s2063_s2 + $0x24] sm:$0xf0]  ;;  %v1438_v36 = vld [vmem:[%s2063_s2 + $0x24] sm:$0xf] }
   0xa   :  { %v1065_v37 = vld [vmem:[%s2063_s2 + $0x28] sm:$0xf0]  ;;  %v1064_v40 = vor.u32 %v1439_v35, %v1063_v34  ;;  %v1055_v42 = vld [vmem:[%s2063_s2 + $0x10] sm:$0xf]  ;;  %v1437_v43 = vld [vmem:[%s2063_s2 + $0x14] sm:$0xf0] }
   0xb   :  { %264 = vmatpush.bf16.msra.mxu2 %v1456_v30  ;;  %v1455_v38 = vld [vmem:[%s2064_s4 + $0x28] sm:$0xff]  ;;  %v1068_v41 = vor.u32 %v1438_v36, %v1065_v37  ;;  %v1436_v44 = vld [vmem:[%s2063_s2 + $0x14] sm:$0xf]  ;;  %v1057_v45 = vld [vmem:[%s2063_s2 + $0x18] sm:$0xf0]  ;;  %v1056_v48 = vor.u32 %v1437_v43, %v1055_v42 }
   0xc   :  { %157 = vmatpush.bf16.msra.mxu0 %v1088_v16  ;;  %350 = vmatpush.bf16.msra.mxu3 %v1464_v31  ;;  %v1463_v39 = vld [vmem:[%s2065_s6 + $0x28] sm:$0xff]  ;;  %v1454_v46 = vld [vmem:[%s2064_s4 + $0x20] sm:$0xff]  ;;  %v1060_v49 = vor.u32 %v1436_v44, %v1057_v45  ;;  %v1453_v54 = vld [vmem:[%s2064_s4 + $0x18] sm:$0xff] }
   0xd   :  { %171 = vmatpush.bf16.msra.mxu1 %v1092_v17  ;;  %v1462_v47 = vld [vmem:[%s2065_s6 + $0x20] sm:$0xff]  ;;  %v1435_v51 = vld [vmem:[%s2063_s2 + $0x4] sm:$0xf0]  ;;  %v1049_v53 = vld [vmem:[%s2063_s2 + $0x8] sm:$0xf0] }
   0xe   :  { %v1047_v50 = vld [vmem:[%s2063_s2] sm:$0xf]  ;;  %v1434_v52 = vld [vmem:[%s2063_s2 + $0x4] sm:$0xf]  ;;  %v1461_v55 = vld [vmem:[%s2065_s6 + $0x18] sm:$0xff] }
   0xf   :  { %265 = vmatpush.bf16.msra.mxu2 %v1455_v38  ;;  %v1048_v56 = vor.u32 %v1435_v51, %v1047_v50  ;;  %v1052_v57 = vor.u32 %v1434_v52, %v1049_v53  ;;  %v1452_v58 = vld [vmem:[%s2064_s4 + $0x10] sm:$0xff]  ;;  %v1433_v60 = vld [vmem:[%s2066_s0] sm:$0xff]  ;;  %v1451_v61 = vld [vmem:[%s2064_s4 + $0x8] sm:$0xff] }
  0x10   :  { %158 = vmatpush.bf16.msra.mxu0 %v1080_v22  ;;  %351 = vmatpush.bf16.msra.mxu3 %v1463_v39  ;;  %v1460_v59 = vld [vmem:[%s2065_s6 + $0x10] sm:$0xff]  ;;  %v1459_v62 = vld [vmem:[%s2065_s6 + $0x8] sm:$0xff]  ;;  %v1450_v63 = vld [vmem:[%s2064_s4] sm:$0xff] }
  0x11   :  { %172 = vmatpush.bf16.msra.mxu1 %v1084_v25  ;;  %v1458_v0 = vld [vmem:[%s2065_s6] sm:$0xff]  ;;  %v1299_v1 = vld [vmem:[%s2063_s2 + $0x70] sm:$0xf]  ;;  %v1498_v2 = vld [vmem:[%s2063_s2 + $0x74] sm:$0xf0] }
  0x12   :  { %v1497_v3 = vld [vmem:[%s2063_s2 + $0x74] sm:$0xf]  ;;  %v1301_v4 = vld [vmem:[%s2063_s2 + $0x78] sm:$0xf0]  ;;  %v1300_v5 = vor.u32 %v1498_v2, %v1299_v1  ;;  %v1291_v7 = vld [vmem:[%s2063_s2 + $0x60] sm:$0xf] }
  0x13   :  { %266 = vmatpush.bf16.msra.mxu2 %v1454_v46  ;;  %v1304_v6 = vor.u32 %v1497_v3, %v1301_v4  ;;  %v1496_v8 = vld [vmem:[%s2063_s2 + $0x64] sm:$0xf0]  ;;  %v1495_v9 = vld [vmem:[%s2063_s2 + $0x64] sm:$0xf]  ;;  %v1293_v11 = vld [vmem:[%s2063_s2 + $0x68] sm:$0xf0] }
  0x14   :  { %159 = vmatpush.bf16.msra.mxu0 %v1072_v32  ;;  %352 = vmatpush.bf16.msra.mxu3 %v1462_v47  ;;  %v1292_v10 = vor.u32 %v1496_v8, %v1291_v7  ;;  %v1296_v12 = vor.u32 %v1495_v9, %v1293_v11  ;;  %v1283_v13 = vld [vmem:[%s2063_s2 + $0x50] sm:$0xf]  ;;  %v1494_v14 = vld [vmem:[%s2063_s2 + $0x54] sm:$0xf0]  ;;  %v1493_v15 = vld [vmem:[%s2063_s2 + $0x54] sm:$0xf] }
  0x15   :  { %173 = vmatpush.bf16.msra.mxu1 %v1076_v33  ;;  %v1284_v16 = vor.u32 %v1494_v14, %v1283_v13  ;;  %v1285_v17 = vld [vmem:[%s2063_s2 + $0x58] sm:$0xf0]  ;;  %v1275_v19 = vld [vmem:[%s2063_s2 + $0x40] sm:$0xf]  ;;  %v1492_v20 = vld [vmem:[%s2063_s2 + $0x44] sm:$0xf0] }
  0x16   :  { %v1288_v18 = vor.u32 %v1493_v15, %v1285_v17  ;;  %v1491_v21 = vld [vmem:[%s2063_s2 + $0x44] sm:$0xf]  ;;  %v1276_v22 = vor.u32 %v1492_v20, %v1275_v19  ;;  %v1277_v23 = vld [vmem:[%s2063_s2 + $0x48] sm:$0xf0]  ;;  %v1267_v25 = vld [vmem:[%s2063_s2 + $0x30] sm:$0xf] }
  0x17   :  { %267 = vmatpush.bf16.msra.mxu2 %v1453_v54  ;;  %v1280_v24 = vor.u32 %v1491_v21, %v1277_v23  ;;  %v1490_v26 = vld [vmem:[%s2063_s2 + $0x34] sm:$0xf0]  ;;  %v1489_v27 = vld [vmem:[%s2063_s2 + $0x34] sm:$0xf]  ;;  %v1269_v29 = vld [vmem:[%s2063_s2 + $0x38] sm:$0xf0] }
  0x18   :  { %160 = vmatpush.bf16.msra.mxu0 %v1064_v40  ;;  %353 = vmatpush.bf16.msra.mxu3 %v1461_v55  ;;  %v1268_v28 = vor.u32 %v1490_v26, %v1267_v25  ;;  %v1272_v30 = vor.u32 %v1489_v27, %v1269_v29  ;;  %v1259_v31 = vld [vmem:[%s2063_s2 + $0x20] sm:$0xf]  ;;  %v1488_v32 = vld [vmem:[%s2063_s2 + $0x24] sm:$0xf0]  ;;  %v1487_v33 = vld [vmem:[%s2063_s2 + $0x24] sm:$0xf] }
  0x19   :  { %174 = vmatpush.bf16.msra.mxu1 %v1068_v41  ;;  %v1261_v34 = vld [vmem:[%s2063_s2 + $0x28] sm:$0xf0]  ;;  %v1260_v35 = vor.u32 %v1488_v32, %v1259_v31  ;;  %v1251_v37 = vld [vmem:[%s2063_s2 + $0x10] sm:$0xf]  ;;  %v1486_v38 = vld [vmem:[%s2063_s2 + $0x14] sm:$0xf0] }
  0x1a   :  { %v1264_v36 = vor.u32 %v1487_v33, %v1261_v34  ;;  %v1485_v39 = vld [vmem:[%s2063_s2 + $0x14] sm:$0xf]  ;;  %v1253_v40 = vld [vmem:[%s2063_s2 + $0x18] sm:$0xf0]  ;;  %v1252_v41 = vor.u32 %v1486_v38, %v1251_v37  ;;  %v1243_v43 = vld [vmem:[%s2063_s2] sm:$0xf] }
  0x1b   :  { %268 = vmatpush.bf16.msra.mxu2 %v1452_v58  ;;  %v1256_v42 = vor.u32 %v1485_v39, %v1253_v40  ;;  %v1484_v44 = vld [vmem:[%s2063_s2 + $0x4] sm:$0xf0]  ;;  %v1483_v45 = vld [vmem:[%s2063_s2 + $0x4] sm:$0xf]  ;;  %v1245_v46 = vld [vmem:[%s2063_s2 + $0x8] sm:$0xf0] }
  0x1c   :  { %161 = vmatpush.bf16.msra.mxu0 %v1056_v48  ;;  %354 = vmatpush.bf16.msra.mxu3 %v1460_v59  ;;  %v63_v47 = vld [vmem:[%s2068_s3] sm:$0x3]  ;;  %v1244_v48 = vor.u32 %v1484_v44, %v1243_v43  ;;  %v1468_v13 = vld [vmem:[%s2069_s8 + $0x10] sm:$0xff]  ;;  %v1467_v14 = vld [vmem:[%s2069_s8 + $0x8] sm:$0xff] }
  0x1d   :  { %175 = vmatpush.bf16.msra.mxu1 %v1060_v49  ;;  %v1248_v49 = vor.u32 %v1483_v45, %v1245_v46  ;;  %v65_v50 = vperm.slane %v63_v47, 0  ;;  %v66_v52 = vperm.slane %v63_v47, 1  ;;  %v1482_v15 = vld [vmem:[%s2071_s1] sm:$0xff]  ;;  %v1506_v17 = vld [vmem:[%s2064_s4 + $0x38] sm:$0xff]  ;;  %v1504_v19 = vld [vmem:[%s2064_s4 + $0x28] sm:$0xff] }
  0x1e   :  { %v1503_v20 = vld [vmem:[%s2064_s4 + $0x20] sm:$0xff]  ;;  %v1502_v21 = vld [vmem:[%s2064_s4 + $0x18] sm:$0xff]  ;;  %v1500_v23 = vld [vmem:[%s2064_s4 + $0x8] sm:$0xff] }
  0x1f   :  { %269 = vmatpush.bf16.msra.mxu2 %v1451_v61  ;;  %v1499_v25 = vld [vmem:[%s2064_s4] sm:$0xff]  ;;  %v1481_v29 = vld [vmem:[%s2074_s10 + $0x38] sm:$0xff]  ;;  %v1480_v31 = vld [vmem:[%s2074_s10 + $0x30] sm:$0xff] }
  0x20   :  { %162 = vmatpush.bf16.msra.mxu0 %v1048_v56  ;;  %355 = vmatpush.bf16.msra.mxu3 %v1459_v62  ;;  %v1473_v56 = vld [vmem:[%s2069_s8 + $0x38] sm:$0xff]  ;;  %v1479_v37 = vld [vmem:[%s2074_s10 + $0x28] sm:$0xff]  ;;  %v553_v39 = vld [vmem:[%s2068_s3] sm:$0x3] }
  0x21   :  { %176 = vmatpush.bf16.msra.mxu1 %v1052_v57  ;;  %v1472_v57 = vld [vmem:[%s2069_s8 + $0x30] sm:$0xff]  ;;  %v1478_v40 = vld [vmem:[%s2074_s10 + $0x20] sm:$0xff]  ;;  %v1477_v45 = vld [vmem:[%s2074_s10 + $0x18] sm:$0xff] }
  0x23   :  { %163 = vmatmul.bf16.vlgmr.msra.gmra.mxu0 %v1433_v60  ;;  %270 = vmatpush.bf16.msra.mxu2 %v1450_v63 }
  0x24   :  { %177 = vmatmul.bf16.vlgmr.msra.gmra.mxu1 %v1433_v60  ;;  %356 = vmatpush.bf16.msra.mxu3 %v1458_v0  ;;  %v1471_v0 = vld [vmem:[%s2069_s8 + $0x28] sm:$0xff] }
  0x25   :  { %432 = vmatpush.bf16.msrb.mxu0 %v1473_v56  ;;  %517 = vmatpush.bf16.msrb.mxu1 %v1481_v29 }
  0x27   :  { %645 = vmatpush.bf16.msrb.mxu2 %v1300_v5  ;;  %v1470_v5 = vld [vmem:[%s2069_s8 + $0x20] sm:$0xff] }
  0x28   :  { %659 = vmatpush.bf16.msrb.mxu3 %v1304_v6 }
  0x29   :  { %433 = vmatpush.bf16.msrb.mxu0 %v1472_v57  ;;  %518 = vmatpush.bf16.msrb.mxu1 %v1480_v31 }
  0x2b   :  { %646 = vmatpush.bf16.msrb.mxu2 %v1292_v10 }
  0x2c   :  { %660 = vmatpush.bf16.msrb.mxu3 %v1296_v12  ;;  %v1469_v12 = vld [vmem:[%s2069_s8 + $0x18] sm:$0xff] }
  0x2d   :  { %434 = vmatpush.bf16.msrb.mxu0 %v1471_v0  ;;  %519 = vmatpush.bf16.msrb.mxu1 %v1479_v37  ;;  %v1526_v37 = vld [vmem:[%s2074_s10 + $0x18] sm:$0xff] }
  0x2f   :  { %647 = vmatpush.bf16.msrb.mxu2 %v1284_v16  ;;  %v1466_v16 = vld [vmem:[%s2069_s8] sm:$0xff] }
  0x30   :  { %661 = vmatpush.bf16.msrb.mxu3 %v1288_v18  ;;  %v1505_v18 = vld [vmem:[%s2064_s4 + $0x30] sm:$0xff] }
  0x31   :  { %435 = vmatpush.bf16.msrb.mxu0 %v1470_v5  ;;  %520 = vmatpush.bf16.msrb.mxu1 %v1478_v40  ;;  %v1522_v5 = vld [vmem:[%s2069_s8 + $0x38] sm:$0xff] }
  0x33   :  { %648 = vmatpush.bf16.msrb.mxu2 %v1276_v22  ;;  %v1501_v22 = vld [vmem:[%s2064_s4 + $0x10] sm:$0xff] }
  0x34   :  { %662 = vmatpush.bf16.msrb.mxu3 %v1280_v24  ;;  %v1532_v24 = vld [vmem:[%s2070_s7] ss:$0 sm:$0xff] }
  0x35   :  { %436 = vmatpush.bf16.msrb.mxu0 %v1469_v12  ;;  %521 = vmatpush.bf16.msrb.mxu1 %v1477_v45  ;;  %v1509_v12 = vld [vmem:[%s2065_s6 + $0x10] sm:$0xff] }
  0x37   :  { %649 = vmatpush.bf16.msrb.mxu2 %v1268_v28 }
  0x38   :  { %663 = vmatpush.bf16.msrb.mxu3 %v1272_v30  ;;  %v1531_v30 = vld [vmem:[%s2067_s5] ss:$0 sm:$0xff] }
  0x39   :  { %437 = vmatpush.bf16.msrb.mxu0 %v1468_v13  ;;  %v1518_v13 = vld [vmem:[%s2069_s8 + $0x18] sm:$0xff] }
  0x3b   :  { %650 = vmatpush.bf16.msrb.mxu2 %v1260_v35 }
  0x3c   :  { %664 = vmatpush.bf16.msrb.mxu3 %v1264_v36 }
  0x3d   :  { %438 = vmatpush.bf16.msrb.mxu0 %v1467_v14  ;;  %v1508_v14 = vld [vmem:[%s2065_s6 + $0x8] sm:$0xff] }
  0x3f   :  { %651 = vmatpush.bf16.msrb.mxu2 %v1252_v41  ;;  %v555_v41 = vperm.slane %v553_v39, 0 }
  0x40   :  { %665 = vmatpush.bf16.msrb.mxu3 %v1256_v42  ;;  %v556_v42 = vperm.slane %v553_v39, 1  ;;  %v1535_v39 = vld [vmem:[%s2075_s11] ss:$0 sm:$0xff] }
  0x41   :  { %439 = vmatpush.bf16.msrb.mxu0 %v1466_v16  ;;  %v1507_v16 = vld [vmem:[%s2065_s6] sm:$0xff] }
  0x43   :  { %652 = vmatpush.bf16.msrb.mxu2 %v1244_v48  ;;  %v1476_v48 = vld [vmem:[%s2074_s10 + $0x10] sm:$0xff] }
  0x44   :  { %666 = vmatpush.bf16.msrb.mxu3 %v1248_v49  ;;  %522 = vmatpush.bf16.msrb.mxu1 %v1476_v48 }
  0x45   :  { %753 = vmatpush.bf16.msra.mxu0 %v1506_v17  ;;  %v1516_v17 = vld [vmem:[%s2069_s8 + $0x8] sm:$0xff] }
  0x49   :  { %754 = vmatpush.bf16.msra.mxu0 %v1505_v18  ;;  %v1515_v18 = vld [vmem:[%s2069_s8] sm:$0xff] }
  0x4d   :  { %755 = vmatpush.bf16.msra.mxu0 %v1504_v19 }
  0x51   :  { %756 = vmatpush.bf16.msra.mxu0 %v1503_v20  ;;  %v1533_v20 = vld [vmem:[%s2072_s9] ss:$0 sm:$0xff] }
  0x55   :  { %757 = vmatpush.bf16.msra.mxu0 %v1502_v21 }
  0x59   :  { %758 = vmatpush.bf16.msra.mxu0 %v1501_v22 }
  0x5d   :  { %759 = vmatpush.bf16.msra.mxu0 %v1500_v23 }
  0x61   :  { %760 = vmatpush.bf16.msra.mxu0 %v1499_v25 }
  0xa0   :  { %v164_v51 = vpop.f32.mrf.mxu0 }
  0xa1   :  { %v178_v53 = vpop.f32.mrf.mxu1  ;;  %v165_v54 = vadd.f32 %v164_v51, %v65_v50 }
  0xa2   :  { %v179_v55 = vadd.f32 %v178_v53, %v66_v52 }
  0xa3   :  { %v183_v58 = vmax.f32 %v165_v54, 0.0 }
  0xa4   :  { %v184_v59 = vmax.f32 %v179_v55, 0.0  ;;  %v1475_v55 = vld [vmem:[%s2074_s10 + $0x8] sm:$0xff] }
  0xa5   :  { %523 = vmatpush.bf16.msrb.mxu1 %v1475_v55 }
  0xa6   :  { %v187_v2 = vpack.c.bf16 %v184_v59, %v183_v58 }
  0xa8   :  { %v166_v60 = vpop.f32.mrf.mxu0  ;;  %v211_v6 = vunpack.c.l.b16 %v187_v2  ;;  %v297_v8 = vunpack.c.h.b16 %v187_v2 }
  0xa9   :  { %v167_v61 = vadd.f32 %v166_v60, %v65_v50  ;;  %v180_v62 = vpop.f32.mrf.mxu1  ;;  %v1474_v60 = vld [vmem:[%s2074_s10] sm:$0xff] }
  0xaa   :  { %v181_v63 = vadd.f32 %v180_v62, %v66_v52  ;;  %524 = vmatpush.bf16.msrb.mxu1 %v1474_v60 }
  0xab   :  { %v185_v1 = vmax.f32 %v167_v61, 0.0 }
  0xac   :  { %v186_v3 = vmax.f32 %v181_v63, 0.0 }
  0xae   :  { %v188_v4 = vpack.c.bf16 %v186_v3, %v185_v1  ;;  %v1514_v3 = vld [vmem:[%s2065_s6 + $0x38] sm:$0xff] }
  0xaf   :  { %839 = vmatpush.bf16.msra.mxu1 %v1514_v3 }
  0xb0   :  { %v212_v7 = vunpack.c.l.b16 %v188_v4  ;;  %v298_v9 = vunpack.c.h.b16 %v188_v4  ;;  %v1513_v4 = vld [vmem:[%s2065_s6 + $0x30] sm:$0xff] }
  0xb2   :  { %v213_v10 = vpack.c.b16 %v212_v7, %v211_v6  ;;  %v299_v11 = vpack.c.b16 %v298_v9, %v297_v8  ;;  %v1512_v6 = vld [vmem:[%s2065_s6 + $0x28] sm:$0xff]  ;;  %v1521_v7 = vld [vmem:[%s2069_s8 + $0x30] sm:$0xff]  ;;  %v1511_v8 = vld [vmem:[%s2065_s6 + $0x20] sm:$0xff] }
  0xb3   :  { %840 = vmatpush.bf16.msra.mxu1 %v1513_v4  ;;  %v1520_v9 = vld [vmem:[%s2069_s8 + $0x28] sm:$0xff] }
  0xb4   :  { %271 = vmatmul.bf16.vlgmr.msra.gmra.mxu2 %v213_v10  ;;  %357 = vmatmul.bf16.vlgmr.msra.gmra.mxu3 %v299_v11  ;;  %v1510_v10 = vld [vmem:[%s2065_s6 + $0x18] sm:$0xff]  ;;  %v1519_v11 = vld [vmem:[%s2069_s8 + $0x20] sm:$0xff] }
  0xb5   :  { %922 = vmatpush.bf16.msra.mxu2 %v1522_v5 }
  0xb7   :  { %841 = vmatpush.bf16.msra.mxu1 %v1512_v6 }
  0xb9   :  { %923 = vmatpush.bf16.msra.mxu2 %v1521_v7 }
  0xbb   :  { %842 = vmatpush.bf16.msra.mxu1 %v1511_v8 }
  0xbd   :  { %924 = vmatpush.bf16.msra.mxu2 %v1520_v9 }
  0xbf   :  { %843 = vmatpush.bf16.msra.mxu1 %v1510_v10 }
  0xc1   :  { %925 = vmatpush.bf16.msra.mxu2 %v1519_v11 }
  0xc3   :  { %844 = vmatpush.bf16.msra.mxu1 %v1509_v12 }
  0xc4   :  { %653 = vmatmul.bf16.vlgmr.msrb.gmra.mxu2 %v1482_v15  ;;  %667 = vmatmul.bf16.vlgmr.msrb.gmra.mxu3 %v1482_v15  ;;  %v1517_v15 = vld [vmem:[%s2069_s8 + $0x10] sm:$0xff] }
  0xc5   :  { %926 = vmatpush.bf16.msra.mxu2 %v1518_v13 }
  0xc7   :  { %845 = vmatpush.bf16.msra.mxu1 %v1508_v14 }
  0xc9   :  { %927 = vmatpush.bf16.msra.mxu2 %v1517_v15 }
  0xcb   :  { %846 = vmatpush.bf16.msra.mxu1 %v1507_v16 }
  0xcd   :  { %928 = vmatpush.bf16.msra.mxu2 %v1516_v17 }
  0xd1   :  { %929 = vmatpush.bf16.msra.mxu2 %v1515_v18 }
 0x137   :  { %v272_v26 = vpop.f32.mrf.mxu2  ;;  %v358_v27 = vpop.f32.mrf.mxu3 }
 0x138   :  { %v359_v28 = vadd.f32 %v1532_v24, %v358_v27  ;;  %v273_v34 = vadd.f32 %v1531_v30, %v272_v26 }
 0x13a   :  { %533 = vst [vmem:[%s2073_s15] sm:$0xff] %v359_v28  ;;  %v1534_v28 = vld [vmem:[%s2067_s5] ss:$0 sm:$0xff] }
 0x13f   :  { %v274_v32 = vpop.f32.mrf.mxu2  ;;  %v360_v33 = vpop.f32.mrf.mxu3 }
 0x140   :  { %v275_v35 = vadd.f32 %v1531_v30, %v274_v32  ;;  %v361_v36 = vadd.f32 %v1532_v24, %v360_v33  ;;  %v1530_v33 = vld [vmem:[%s2074_s10 + $0x38] sm:$0xff] }
 0x141   :  { %1007 = vmatpush.bf16.msra.mxu3 %v1530_v33 }
 0x142   :  { %v363_v38 = vpack.c.bf16 %v275_v35, %v273_v34  ;;  %534 = vst [vmem:[%s2073_s15 + $0x8] sm:$0xff] %v361_v36  ;;  %v1529_v34 = vld [vmem:[%s2074_s10 + $0x30] sm:$0xff]  ;;  %v1528_v35 = vld [vmem:[%s2074_s10 + $0x28] sm:$0xff]  ;;  %v1527_v36 = vld [vmem:[%s2074_s10 + $0x20] sm:$0xff] }
 0x144   :  { %440 = vmatmul.bf16.vlgmr.msrb.gmra.mxu0 %v363_v38  ;;  %v1525_v38 = vld [vmem:[%s2074_s10 + $0x10] sm:$0xff] }
 0x145   :  { %1008 = vmatpush.bf16.msra.mxu3 %v1529_v34 }
 0x147   :  { %v654_v43 = vpop.f32.mrf.mxu2  ;;  %v668_v44 = vpop.f32.mrf.mxu3 }
 0x148   :  { %v655_v46 = vadd.f32 %v654_v43, %v555_v41  ;;  %v669_v47 = vadd.f32 %v668_v44, %v556_v42  ;;  %v1523_v43 = vld [vmem:[%s2074_s10] sm:$0xff] }
 0x149   :  { %1009 = vmatpush.bf16.msra.mxu3 %v1528_v35 }
 0x14a   :  { %v673_v49 = vmax.f32 %v655_v46, 0.0  ;;  %v674_v50 = vmax.f32 %v669_v47, 0.0  ;;  %v1536_v46 = vld [vmem:[%s2070_s7] ss:$0 sm:$0xff] }
 0x14c   :  { %v677_v56 = vpack.c.bf16 %v674_v50, %v673_v49 }
 0x14d   :  { %1010 = vmatpush.bf16.msra.mxu3 %v1527_v36 }
 0x14e   :  { %v701_v61 = vunpack.c.l.b16 %v677_v56  ;;  %v787_v62 = vunpack.c.h.b16 %v677_v56 }
 0x14f   :  { %v656_v51 = vpop.f32.mrf.mxu2  ;;  %v670_v52 = vpop.f32.mrf.mxu3 }
 0x150   :  { %v657_v53 = vadd.f32 %v656_v51, %v555_v41  ;;  %v671_v54 = vadd.f32 %v670_v52, %v556_v42  ;;  %v1524_v41 = vld [vmem:[%s2074_s10 + $0x8] sm:$0xff]  ;;  %v1537_v52 = vld [vmem:[%s2072_s9] ss:$0 sm:$0xff] }
 0x151   :  { %1011 = vmatpush.bf16.msra.mxu3 %v1526_v37 }
 0x152   :  { %v675_v57 = vmax.f32 %v657_v53, 0.0  ;;  %v676_v58 = vmax.f32 %v671_v54, 0.0 }
 0x154   :  { %v678_v59 = vpack.c.bf16 %v676_v58, %v675_v57 }
 0x155   :  { %1012 = vmatpush.bf16.msra.mxu3 %v1525_v38 }
 0x156   :  { %v702_v63 = vunpack.c.l.b16 %v678_v59  ;;  %v788_v0 = vunpack.c.h.b16 %v678_v59  ;;  %v1538_v59 = vld [vmem:[%s2075_s11] ss:$0 sm:$0xff] }
 0x158   :  { %v703_v1 = vpack.c.b16 %v702_v63, %v701_v61  ;;  %v789_v2 = vpack.c.b16 %v788_v0, %v787_v62 }
 0x159   :  { %1013 = vmatpush.bf16.msra.mxu3 %v1524_v41 }
 0x15a   :  { %761 = vmatmul.bf16.vlgmr.msra.gmra.mxu0 %v703_v1 }
 0x15d   :  { %1014 = vmatpush.bf16.msra.mxu3 %v1523_v43 }
 0x1c1   :  { %v441_v19 = vpop.f32.mrf.mxu0 }
 0x1c2   :  { %v442_v21 = vadd.f32 %v1533_v20, %v441_v19 }
 0x1c4   :  { %v446_v24 = vmax.f32 %v442_v21, 0.0 }
 0x1c9   :  { %v443_v22 = vpop.f32.mrf.mxu0 }
 0x1ca   :  { %v444_v23 = vadd.f32 %v1533_v20, %v443_v22 }
 0x1cc   :  { %v447_v25 = vmax.f32 %v444_v23, 0.0 }
 0x1ce   :  { %v448_v26 = vpack.c.bf16 %v447_v25, %v446_v24 }
 0x1d0   :  { %525 = vmatmul.bf16.vlgmr.msrb.gmra.mxu1 %v448_v26 }
 0x1d7   :  { %v762_v27 = vpop.f32.mrf.mxu0 }
 0x1d8   :  { %v763_v30 = vadd.f32 %v1534_v28, %v762_v27 }
 0x1df   :  { %v764_v29 = vpop.f32.mrf.mxu0 }
 0x1e0   :  { %v765_v31 = vadd.f32 %v1534_v28, %v764_v29  ;;  %847 = vmatmul.bf16.vlgmr.msra.gmra.mxu1 %v789_v2 }
 0x1e2   :  { %v853_v32 = vpack.c.bf16 %v765_v31, %v763_v30 }
 0x1e4   :  { %930 = vmatmul.bf16.vlgmr.msra.gmra.mxu2 %v853_v32 }
 0x24d   :  { %v526_v40 = vpop.f32.mrf.mxu1 }
 0x24e   :  { %v527_v42 = vadd.f32 %v1535_v39, %v526_v40 }
 0x250   :  { %531 = vst [vmem:[%s2076_s12] sm:$0xff] %v527_v42 }
 0x255   :  { %v528_v44 = vpop.f32.mrf.mxu1 }
 0x256   :  { %v529_v45 = vadd.f32 %v1535_v39, %v528_v44 }
 0x258   :  { %532 = vst [vmem:[%s2076_s12 + $0x8] sm:$0xff] %v529_v45 }
 0x25d   :  { %v848_v47 = vpop.f32.mrf.mxu1 }
 0x25e   :  { %v849_v48 = vadd.f32 %v1536_v46, %v848_v47 }
 0x260   :  { %1023 = vst [vmem:[%s2077_s14] sm:$0xff] %v849_v48 }
 0x265   :  { %v850_v49 = vpop.f32.mrf.mxu1 }
 0x266   :  { %v851_v50 = vadd.f32 %v1536_v46, %v850_v49 }
 0x267   :  { %v931_v51 = vpop.f32.mrf.mxu2 }
 0x268   :  { %1024 = vst [vmem:[%s2077_s14 + $0x8] sm:$0xff] %v851_v50  ;;  %v932_v53 = vadd.f32 %v1537_v52, %v931_v51 }
 0x26a   :  { %v936_v56 = vmax.f32 %v932_v53, 0.0 }
 0x26f   :  { %v933_v54 = vpop.f32.mrf.mxu2 }
 0x270   :  { %v934_v55 = vadd.f32 %v1537_v52, %v933_v54 }
 0x272   :  { %v937_v57 = vmax.f32 %v934_v55, 0.0 }
 0x274   :  { %v938_v58 = vpack.c.bf16 %v937_v57, %v936_v56 }
 0x276   :  { %1015 = vmatmul.bf16.vlgmr.msra.gmra.mxu3 %v938_v58 }
 0x2f9   :  { %v1016_v60 = vpop.f32.mrf.mxu3 }
 0x2fa   :  { %v1017_v61 = vadd.f32 %v1538_v59, %v1016_v60 }
 0x2fc   :  { %1021 = vst [vmem:[%s2078_s13] sm:$0xff] %v1017_v61 }
 0x301   :  { %v1018_v62 = vpop.f32.mrf.mxu3 }
 0x302   :  { %v1019_v63 = vadd.f32 %v1538_v59, %v1018_v62 }
 0x304   :  { %1022 = vst [vmem:[%s2078_s13 + $0x8] sm:$0xff] %v1019_v63 }

</bundles_post_ra>
